<compile_context>
chip_gen: v7x
topology: tpu7x:2x2x1
jax: 0.10.0
libtpu: 0.0.40
codegen_flags: <defaults>
</compile_context>

<pallas_src>
import functools

import jax
import jax.numpy as jnp
from jax.experimental import pallas as pl
from jax.experimental.pallas import tpu as pltpu


_TOKEN_BLOCK = 256                      # multiple of MXU M dim
_NSEM = 8                               # outstanding row-DMAs in the gather path
_ONEHOT_MAX_VOCAB = 4096                # keep the (tpb, V) one-hot cheap
_ONEHOT_MAX_TABLE_BYTES = 8 * 1024 * 1024  # 2x-buffered table must fit v7x VMEM easily


def _onehot_gather_kernel(ids_ref, w_ref, o_ref, *, vocab):
    """Gather a block of embedding rows via a one-hot MXU matmul.

    ids_ref : VMEM (tpb, 1) int32   -- token ids for this block (pipelined)
    w_ref   : VMEM (V, H)           -- resident embedding table (fetched once)
    o_ref   : VMEM (tpb, H)         -- lane+sublane-dense output block
    """
    ids = ids_ref[...]                                              # (tpb, 1)
    tok_iota = jax.lax.broadcasted_iota(jnp.int32, (ids.shape[0], vocab), 1)
    # Out-of-range ids (tail-block padding) produce an all-zero row -> harmless.
    onehot = (ids == tok_iota).astype(w_ref.dtype)                  # (tpb, V)
    # HIGHEST keeps an f32 table lookup bit-accurate (multi-pass MXU);
    # for bf16 tables the native bf16 path is already exact.
    precision = (jax.lax.Precision.HIGHEST
                 if w_ref.dtype == jnp.float32 else jax.lax.Precision.DEFAULT)
    acc = jnp.dot(onehot, w_ref[...],
                  preferred_element_type=jnp.float32, precision=precision)
    o_ref[...] = acc.astype(o_ref.dtype)


def _dma_gather_kernel(ids_ref, w_hbm, o_ref, sems, *,
                       tokens_per_block, total_tokens, nsem):
    """Gather one embedding row per token via async HBM->VMEM DMAs.

    ids_ref : SMEM (total,) int32   -- scalar-prefetched flat token ids
    w_hbm   : HBM  (V, H)           -- embedding table (memory_space=pl.ANY)
    o_ref   : VMEM (tpb, H)         -- output block (direct DMA destination)
    sems    : DMA semaphores (nsem,) -- ring of in-flight copy slots
    """
    base = pl.program_id(0) * tokens_per_block

    def row_copy(t):
        tok = ids_ref[base + t]
        return pltpu.make_async_copy(
            w_hbm.at[pl.ds(tok, 1), :],
            o_ref.at[pl.ds(t, 1), :],
            sems.at[t % nsem],
        )

    def issue(t):
        @pl.when(base + t < total_tokens)      # tail-block guard
        def _():
            row_copy(t).start()

    def drain(t):
        @pl.when(base + t < total_tokens)
        def _():
            row_copy(t).wait()

    n_prologue = min(nsem, tokens_per_block)
    for t in range(n_prologue):                # fill the in-flight window
        issue(t)

    def body(t, carry):
        drain(t - nsem)                        # release the slot we are about to reuse
        issue(t)
        return carry

    jax.lax.fori_loop(n_prologue, tokens_per_block, body, 0, unroll=8)

    for t in range(max(0, tokens_per_block - nsem), tokens_per_block):
        drain(t)                               # wait out the tail window


def _pick_token_block(total):
    return total if total <= _TOKEN_BLOCK else _TOKEN_BLOCK


def embedding_forward(input_ids, input_mask, weight, past_length=None,
                      *, force_dma_gather=False):
    """Mirror of llama_bitnet Embedding.forward (single device).

    input_ids : (batch, seq) int
    input_mask: (batch, seq) {0,1} right-padded mask
    weight    : (vocab, hidden) embedding table (padding row already zeroed)
    Returns {'input_embeds': (seq, batch, hidden), 'past_length': (batch,)}
    """
    B, S = input_ids.shape
    V, H = weight.shape

    # ---- AttachableStore bookkeeping, expressed functionally (plain-JAX glue) ----
    if past_length is None:
        past_length = jnp.zeros((B,), jnp.int32)
    cumsum_mask = jnp.cumsum(input_mask.astype(jnp.int32), axis=-1)
    new_past_length = past_length + cumsum_mask[:, -1]

    # ---- input_ids.transpose(0, 1): (batch, seq) -> (seq, batch) ----
    ids_sb = input_ids.T.astype(jnp.int32)                 # (S, B), tiny int copy
    total = S * B
    tpb = _pick_token_block(total)
    grid = (pl.cdiv(total, tpb),)

    table_bytes = V * H * weight.dtype.itemsize
    use_resident = (not force_dma_gather
                    and V <= _ONEHOT_MAX_VOCAB
                    and table_bytes <= _ONEHOT_MAX_TABLE_BYTES)

    if use_resident:
        # --- One-hot MXU gather with the table resident in VMEM ---
        ids_col = ids_sb.reshape(total, 1)                  # (total, 1) id column
        out_block_bytes = tpb * H * weight.dtype.itemsize
        onehot_bytes = tpb * V * max(4, weight.dtype.itemsize)
        vmem_limit = int(min(
            64 * 1024 * 1024,
            max(32 * 1024 * 1024,
                2 * table_bytes + 2 * out_block_bytes + onehot_bytes
                + 4 * 1024 * 1024)))

        out_flat = pl.pallas_call(
            functools.partial(_onehot_gather_kernel, vocab=V),
            out_shape=jax.ShapeDtypeStruct((total, H), weight.dtype),
            grid=grid,
            in_specs=[
                # ids: blocked, pipelined VMEM input.
                pl.BlockSpec((tpb, 1), lambda i: (i, 0)),
                # Table: constant block index -> DMA'd once, stays resident.
                # TODO(synk): single-buffering (pl.Buffered(1)) would halve the
                #             resident-table VMEM cost; budgeted for 2x instead.
                pl.BlockSpec((V, H), lambda i: (0, 0)),
            ],
            out_specs=pl.BlockSpec((tpb, H), lambda i: (i, 0)),
            compiler_params=pltpu.CompilerParams(
                dimension_semantics=("parallel",),
                vmem_limit_bytes=vmem_limit),
        )(ids_col, weight)
    else:
        # --- Table stays in HBM; per-row async DMA gather, NSEM copies in flight ---
        ids_flat = ids_sb.reshape(total)                    # (total,) prefetched ids
        # TODO(synk): for very long sequences feed ids as a blocked SMEM input
        #             instead of scalar-prefetching the whole array.
        kernel = functools.partial(_dma_gather_kernel,
                                   tokens_per_block=tpb,
                                   total_tokens=total,
                                   nsem=_NSEM)
        out_flat = pl.pallas_call(
            kernel,
            out_shape=jax.ShapeDtypeStruct((total, H), weight.dtype),
            grid_spec=pltpu.PrefetchScalarGridSpec(
                num_scalar_prefetch=1,
                grid=grid,
                in_specs=[pl.BlockSpec(memory_space=pl.ANY)],       # weight in HBM
                out_specs=pl.BlockSpec((tpb, H), lambda i, ids: (i, 0)),
                scratch_shapes=[pltpu.SemaphoreType.DMA((_NSEM,))],
            ),
            compiler_params=pltpu.CompilerParams(
                dimension_semantics=("parallel",)),
        )(ids_flat, weight)

    # (S*B, H) -> (S, B, H): pure leading-dim split, no data movement.
    input_embeds = out_flat.reshape(S, B, H)
    return {"input_embeds": input_embeds, "past_length": new_past_length}


if __name__ == "__main__":
    key = jax.random.PRNGKey(0)
    k_w, k_w2, k_ids, k_ids2 = jax.random.split(key, 4)

    PAD_ID = 3
    V, H = 512, 128

    # ---- Test 1: small-vocab resident path (one-hot MXU gather), single block ----
    B, S = 2, 8
    weight = jax.random.normal(k_w, (V, H), dtype=jnp.bfloat16)
    weight = weight.at[PAD_ID].set(0.0)        # nn.Embedding(padding_idx=pad_token_id)
    input_ids = jax.random.randint(k_ids, (B, S), 0, V, dtype=jnp.int32)
    input_mask = jnp.ones((B, S), jnp.int32).at[1, S - 2:].set(0)   # right padding
    input_ids = jnp.where(input_mask == 1, input_ids, PAD_ID)

    out = embedding_forward(input_ids, input_mask, weight)
    embeds = jax.block_until_ready(out["input_embeds"])
    assert embeds.shape == (S, B, H)
    ref = weight[input_ids.T]                  # (S, B, H)
    assert jnp.allclose(embeds.astype(jnp.float32), ref.astype(jnp.float32),
                        atol=1e-6, rtol=1e-6), "resident-path gather mismatch"
    assert jnp.array_equal(out["past_length"],
                           input_mask.sum(-1).astype(jnp.int32))

    # ---- Test 2: resident path with a multi-block grid (768 tokens = 3 x 256) ----
    B2, S2 = 2, 384
    ids2 = jax.random.randint(k_ids2, (B2, S2), 0, V, dtype=jnp.int32)
    mask2 = jnp.ones((B2, S2), jnp.int32)
    out2 = embedding_forward(ids2, mask2, weight)
    embeds2 = jax.block_until_ready(out2["input_embeds"])
    assert jnp.allclose(embeds2.astype(jnp.float32),
                        weight[ids2.T].astype(jnp.float32),
                        atol=1e-6, rtol=1e-6), "multi-block resident gather mismatch"

    # ---- Test 3: HBM DMA-gather path (the large-vocab path, forced here) ----
    weight_f32 = jax.random.normal(k_w2, (V, H), dtype=jnp.float32)
    out3 = embedding_forward(ids2, mask2, weight_f32, force_dma_gather=True)
    embeds3 = jax.block_until_ready(out3["input_embeds"])
    assert jnp.array_equal(embeds3, weight_f32[ids2.T]), "dma-gather mismatch"

    print("KERNEL_OK")
</pallas_src>

<mosaic_0001>
module attributes {stable_mosaic.version = 11 : i64} {
  func.func @_onehot_gather_kernel(%arg0: i32, %arg1: memref<16x1xi32, #tpu.memory_space<vmem>>, %arg2: memref<512x128xbf16, #tpu.memory_space<vmem>>, %arg3: memref<16x128xbf16, #tpu.memory_space<vmem>>) attributes {dimension_semantics = [#tpu.dimension_semantics<parallel>], iteration_bounds = array<i64: 1>, scalar_prefetch = 0 : i64, scratch_operands = 0 : i64, tpu.core_type = #tpu.core_type<tc>, window_params = [{transform_indices = @transform_0, window_bounds = array<i64: 16, 1>}, {pipeline_mode = #tpu.pipeline_mode<synchronous>, transform_indices = @transform_1, window_bounds = array<i64: 512, 128>}, {transform_indices = @transform_2, window_bounds = array<i64: 16, 128>}]} {
    %c0 = arith.constant 0 : index
    %c0_0 = arith.constant 0 : index
    %0 = vector.load %arg1[%c0, %c0_0] : memref<16x1xi32, #tpu.memory_space<vmem>>, vector<16x1xi32>
    %1 = tpu.iota {dimensions = array<i32: 1>} : vector<16x512xi32>
    %2 = vector.broadcast %0 : vector<16x1xi32> to vector<16x512xi32>
    %3 = arith.cmpi eq, %2, %1 : vector<16x512xi32>
    %4 = arith.extui %3 : vector<16x512xi1> to vector<16x512xi32>
    %5 = arith.sitofp %4 : vector<16x512xi32> to vector<16x512xf32>
    %6 = arith.truncf %5 : vector<16x512xf32> to vector<16x512xbf16>
    %c0_1 = arith.constant 0 : index
    %c0_2 = arith.constant 0 : index
    %7 = vector.load %arg2[%c0_1, %c0_2] : memref<512x128xbf16, #tpu.memory_space<vmem>>, vector<512x128xbf16>
    %cst = arith.constant dense<0.000000e+00> : vector<16x128xf32>
    %8 = tpu.matmul %6, %7, %cst {dimension_numbers = #tpu.dot_dimension_numbers<[1], [0], [0], [1], [0, 0, 1, 1], [], []>} : vector<16x512xbf16>, vector<512x128xbf16>, vector<16x128xf32> -> vector<16x128xf32>
    %9 = arith.truncf %8 : vector<16x128xf32> to vector<16x128xbf16>
    %c0_3 = arith.constant 0 : index
    %c0_4 = arith.constant 0 : index
    %10 = vector.load %arg3[%c0_3, %c0_4] : memref<16x128xbf16, #tpu.memory_space<vmem>>, vector<16x128xbf16>
    tpu.vector_store %arg3[%c0_3, %c0_4], %9 {strides = array<i32>} : memref<16x128xbf16, #tpu.memory_space<vmem>>, vector<16x128xbf16>,
    return
  }
  func.func @transform_0(%arg0: i32) -> (i32, i32) {
    %c0_i32 = arith.constant 0 : i32
    %c0_i32_0 = arith.constant 0 : i32
    return %arg0, %c0_i32 : i32, i32
  }
  func.func @transform_1(%arg0: i32) -> (i32, i32) {
    %c0_i32 = arith.constant 0 : i32
    %c0_i32_0 = arith.constant 0 : i32
    %c0_i32_1 = arith.constant 0 : i32
    return %c0_i32, %c0_i32_0 : i32, i32
  }
  func.func @transform_2(%arg0: i32) -> (i32, i32) {
    %c0_i32 = arith.constant 0 : i32
    %c0_i32_0 = arith.constant 0 : i32
    return %arg0, %c0_i32 : i32, i32
  }
}

</mosaic_0001>

<bundles_post_ra>
// kernel: tpu_custom_call.1
= control target key start
LH: loop header
LB: loop body
LE: loop exit
PB: predicated region body
PF: predicated region fallthrough
CT: control target
= control target key end

     0   :  { %7 = vsyncpa [#allocation3], 0  ;;  %s678_s0 = inlined_call_operand.vmem [shape: s32[16,1], index: 0, kind: input, shape index: {}]   ;;  %s679_s1 = inlined_call_operand.hbm [shape: bf16[512,128], index: 1, kind: input, shape index: {}]   ;;  %s680_s2 = inlined_call_operand.hbm [shape: bf16[16,128], index: 2, kind: output, shape index: {}]  }
   0x1   :  { %8 = vsyncpa [#allocation4], 0  ;;  %s621_s9 = smov [#allocation2]   ;;  %s573_s13 = scalar_lea.hbm %s679_s1, 4096 }
   0x2   :  { %s16_s10 = sshll.u32 %s621_s9, 4  ;;  %p574_p0 = scmp.ne.s32.totalorder %s679_s1, %s573_s13  ;;  %s17_s10 = int_to_ptr.vmem [resolvable:$true] %s16_s10 }
   0x3   :  { %p577_p1 = scmp.lt.u32.totalorder %s573_s13, %s679_s1 }
   0x5   :  { %p579_p2 = pnand %p577_p1, %p574_p0 }
   0x7   :  { %582 = shalt.err (!%p579_p2)
}
   0x8   :  { %s583_s18 = scalar_lea.vmem %s17_s10, 4096  ;;  %p588_p4 = scmp.lt.s32.totalorder %s17_s10, %s17_s10 }
   0x9   :  { %p584_p3 = scmp.ne.s32.totalorder %s17_s10, %s583_s18  ;;  %p589_p5 = scmp.lt.s32.totalorder %s583_s18, %s583_s18 }
   0xb   :  { %p590_p6 = por %p589_p5, %p588_p4 }
   0xd   :  { %p591_p7 = pnand %p590_p6, %p584_p3 }
   0xf   :  { %594 = shalt.err (!%p591_p7)
}
  0x10   :  { %s622_s19 = smov 64   ;;  %s623_s20 = smov 4  }
  0x11   :  { %22 = dma.hbm_to_vmem [thread:$0]  %s679_s1, 4096, %s17_s10, [#allocation3], %s622_s19, %s622_s19, %s623_s20  }
  0x12   :  { %617 = dma.done.wait [#allocation3], 4096  }
  0x13   :  { %618 = vsyncadd [#allocation3], 4294963200  ;;  %v624_v0 = vmov 0   ;;  %v27_v1 = vld [vmem:[%s678_s0] sm:$0xff]  ;;  %v28_v2 = vld [vmem:[%s678_s0 + $0x8] sm:$0xff]  ;;  %v29_v35 = vlaneseq  ;;  %s626_s0 = smov [#allocation5]  }
  0x14   :  { %540 = vset.pattern.permute.xlu0 %v624_v0  ;;  %v541_v3 = vld [vmem:[#allocation2 + $0x40] sm:$0xff]   ;;  %v545_v7 = vld [vmem:[#allocation2 + $0x48] sm:$0xff]   ;;  %v549_v11 = vld [vmem:[#allocation2 + $0x50] sm:$0xff]   ;;  %v625_v42 = vmov 1.0|1.0   ;;  %s421_s1 = sshll.u32 %s626_s0, 4  ;;  %s422_s1 = int_to_ptr.vmem [resolvable:$true] %s421_s1 }
  0x15   :  { %35 = vperm.xlu0 %540, %v27_v1   ;;  %v542_v4 = vld [vmem:[#allocation2 + $0xc0] sm:$0xff]   ;;  %490 = vmatprep.subr.bf16.mxu0 %v541_v3  ;;  %v546_v8 = vld [vmem:[#allocation2 + $0xc8] sm:$0xff]   ;;  %v550_v12 = vld [vmem:[#allocation2 + $0xd0] sm:$0xff]   ;;  %v30_v36 = vand.u32 127, %v29_v35  ;;  %s595_s27 = scalar_lea.vmem %s422_s1, 128  ;;  %p600_p9 = scmp.lt.s32.totalorder %s422_s1, %s422_s1 }
  0x16   :  { %v543_v5 = vld [vmem:[#allocation2] sm:$0xff]   ;;  %512 = vmatprep.subr.bf16.mxu1 %v542_v4  ;;  %v547_v9 = vld [vmem:[#allocation2 + $0x8] sm:$0xff]   ;;  %v551_v13 = vld [vmem:[#allocation2 + $0x10] sm:$0xff]   ;;  %p596_p8 = scmp.ne.s32.totalorder %s422_s1, %s595_s27  ;;  %p601_p10 = scmp.lt.s32.totalorder %s595_s27, %s595_s27 }
  0x17   :  { %v544_v6 = vld [vmem:[#allocation2 + $0x80] sm:$0xff]   ;;  %491 = vmatpush3.bf16.msra.mxu0 %v543_v5  ;;  %v548_v10 = vld [vmem:[#allocation2 + $0x88] sm:$0xff]   ;;  %v552_v14 = vld [vmem:[#allocation2 + $0x90] sm:$0xff]   ;;  %v31_v38 = vadd.s32 128, %v30_v36  ;;  %v33_v39 = vadd.s32 384, %v30_v36  ;;  %v32_v40 = vadd.s32 256, %v30_v36 }
  0x18   :  { %513 = vmatpush3.bf16.msra.mxu1 %v544_v6  ;;  %492 = vmatprep.subr.bf16.mxu0 %v545_v7  ;;  %v553_v15 = vld [vmem:[#allocation2 + $0x58] sm:$0xff]   ;;  %v557_v19 = vld [vmem:[#allocation2 + $0x60] sm:$0xff]   ;;  %v561_v23 = vld [vmem:[#allocation2 + $0x68] sm:$0xff]   ;;  %p602_p11 = por %p601_p10, %p600_p9 }
  0x19   :  { %38 = vperm.xlu0 %540, %v28_v2   ;;  %514 = vmatprep.subr.bf16.mxu1 %v546_v8  ;;  %v554_v16 = vld [vmem:[#allocation2 + $0xd8] sm:$0xff]   ;;  %v558_v20 = vld [vmem:[#allocation2 + $0xe0] sm:$0xff]   ;;  %v562_v24 = vld [vmem:[#allocation2 + $0xe8] sm:$0xff]  }
  0x1a   :  { %v555_v17 = vld [vmem:[#allocation2 + $0x18] sm:$0xff]   ;;  %v559_v21 = vld [vmem:[#allocation2 + $0x20] sm:$0xff]   ;;  %v563_v25 = vld [vmem:[#allocation2 + $0x28] sm:$0xff]   ;;  %p603_p12 = pnand %p602_p11, %p596_p8 }
  0x1b   :  { %493 = vmatpush3.bf16.msra.mxu0 %v547_v9  ;;  %v556_v18 = vld [vmem:[#allocation2 + $0x98] sm:$0xff]   ;;  %v560_v22 = vld [vmem:[#allocation2 + $0xa0] sm:$0xff]   ;;  %v564_v26 = vld [vmem:[#allocation2 + $0xa8] sm:$0xff]  }
  0x1c   :  { %515 = vmatpush3.bf16.msra.mxu1 %v548_v10  ;;  %494 = vmatprep.subr.bf16.mxu0 %v549_v11  ;;  %v565_v27 = vld [vmem:[#allocation2 + $0x70] sm:$0xff]   ;;  %v569_v31 = vld [vmem:[#allocation2 + $0x78] sm:$0xff]  }
  0x1d   :  { %516 = vmatprep.subr.bf16.mxu1 %v550_v12  ;;  %v566_v28 = vld [vmem:[#allocation2 + $0xf0] sm:$0xff]   ;;  %v570_v32 = vld [vmem:[#allocation2 + $0xf8] sm:$0xff]  }
  0x1e   :  { %v567_v29 = vld [vmem:[#allocation2 + $0x30] sm:$0xff]   ;;  %v571_v33 = vld [vmem:[#allocation2 + $0x38] sm:$0xff]  }
  0x1f   :  { %495 = vmatpush3.bf16.msra.mxu0 %v551_v13  ;;  %v568_v30 = vld [vmem:[#allocation2 + $0xb0] sm:$0xff]   ;;  %v572_v34 = vld [vmem:[#allocation2 + $0xb8] sm:$0xff]  }
  0x20   :  { %517 = vmatpush3.bf16.msra.mxu1 %v552_v14  ;;  %496 = vmatprep.subr.bf16.mxu0 %v553_v15 }
  0x21   :  { %518 = vmatprep.subr.bf16.mxu1 %v554_v16 }
  0x23   :  { %497 = vmatpush3.bf16.msra.mxu0 %v555_v17 }
  0x24   :  { %519 = vmatpush3.bf16.msra.mxu1 %v556_v18  ;;  %498 = vmatprep.subr.bf16.mxu0 %v557_v19 }
  0x25   :  { %520 = vmatprep.subr.bf16.mxu1 %v558_v20 }
  0x27   :  { %499 = vmatpush3.bf16.msra.mxu0 %v559_v21 }
  0x28   :  { %521 = vmatpush3.bf16.msra.mxu1 %v560_v22  ;;  %500 = vmatprep.subr.bf16.mxu0 %v561_v23 }
  0x29   :  { %522 = vmatprep.subr.bf16.mxu1 %v562_v24 }
  0x2b   :  { %501 = vmatpush3.bf16.msra.mxu0 %v563_v25 }
  0x2c   :  { %523 = vmatpush3.bf16.msra.mxu1 %v564_v26  ;;  %502 = vmatprep.subr.bf16.mxu0 %v565_v27 }
  0x2d   :  { %524 = vmatprep.subr.bf16.mxu1 %v566_v28 }
  0x2f   :  { %503 = vmatpush3.bf16.msra.mxu0 %v567_v29 }
  0x30   :  { %525 = vmatpush3.bf16.msra.mxu1 %v568_v30  ;;  %504 = vmatprep.subr.bf16.mxu0 %v569_v31 }
  0x31   :  { %526 = vmatprep.subr.bf16.mxu1 %v570_v32 }
  0x33   :  { %505 = vmatpush3.bf16.msra.mxu0 %v571_v33 }
  0x34   :  { %527 = vmatpush3.bf16.msra.mxu1 %v572_v34 }
  0x94   :  { %v36_v37 = vpop.permute.xlu0 %35 }
  0x95   :  { %vm41_vm1 = vcmp.eq.s32.totalorder %v36_v37, %v31_v38  ;;  %vm43_vm6 = vcmp.eq.s32.totalorder %v36_v37, %v33_v39  ;;  %vm40_vm8 = vcmp.eq.s32.totalorder %v36_v37, %v30_v36  ;;  %vm42_vm10 = vcmp.eq.s32.totalorder %v36_v37, %v32_v40 }
  0x98   :  { %v39_v41 = vpop.permute.xlu0 %38 }
  0x99   :  { %vm44_vm0 = vcmp.eq.s32.totalorder %v39_v41, %v30_v36  ;;  %vm45_vm2 = vcmp.eq.s32.totalorder %v39_v41, %v31_v38  ;;  %vm47_vm3 = vcmp.eq.s32.totalorder %v39_v41, %v33_v39  ;;  %vm46_vm4 = vcmp.eq.s32.totalorder %v39_v41, %v32_v40 }
  0x9a   :  { %vm473_vm5 = vmpackc.low %vm45_vm2, %vm41_vm1 }
  0x9b   :  { %474 = vmatprep.mubr.msk.bf16.mxu0 %vm473_vm5, %v625_v42  ;;  %vm477_vm7 = vmpackc.low %vm47_vm3, %vm43_vm6 }
  0x9c   :  { %478 = vmatprep.mubr.msk.bf16.mxu1 %vm477_vm7, %v625_v42  ;;  %vm475_vm9 = vmpackc.low %vm44_vm0, %vm40_vm8 }
  0x9d   :  { %476 = vmatmul.mubr.msk.bf16.vlgmr.msra.gmra.mrb[0].mxu0 %vm475_vm9, %v625_v42  ;;  %vm479_vm11 = vmpackc.low %vm46_vm4, %vm42_vm10 }
  0x9e   :  { %480 = vmatmul.mubr.msk.bf16.vlgmr.msra.gmra.mrb[0].mxu1 %vm479_vm11, %v625_v42 }
 0x170   :  { %v506_v43 = vpop.f32.mrb[0].mxu0 }
 0x171   :  { %v528_v44 = vpop.f32.mrb[0].mxu1  ;;  %v507_v45 = vpop.f32.mrb[1].mxu0 }
 0x172   :  { %v508_v46 = vadd.f32 %v507_v45, %v506_v43  ;;  %v529_v47 = vpop.f32.mrb[1].mxu1  ;;  %v509_v48 = vpop.f32.mrb[2].mxu0 }
 0x173   :  { %v530_v49 = vadd.f32 %v529_v47, %v528_v44  ;;  %v531_v50 = vpop.f32.mrb[2].mxu1  ;;  %v510_v51 = vpop.f32.mrb[3].mxu0 }
 0x174   :  { %v511_v52 = vadd.f32 %v510_v51, %v509_v48  ;;  %v532_v53 = vpop.f32.mrb[3].mxu1 }
 0x175   :  { %v400_v54 = vadd.f32 %v530_v49, %v508_v46  ;;  %v533_v55 = vadd.f32 %v532_v53, %v531_v50 }
 0x177   :  { %v403_v56 = vadd.f32 %v533_v55, %v511_v52 }
 0x179   :  { %v488_v57 = vpack.c.bf16 %v403_v56, %v400_v54 }
 0x17b   :  { %489 = vst [vmem:[#allocation5] sm:$0xff] %v488_v57  }
 0x17c   :  { %606 = shalt.err (!%p603_p12)
}
 0x17d   :  { %s607_s30 = scalar_lea.hbm %s680_s2, 128 }
 0x17e   :  { %p608_p13 = scmp.ne.s32.totalorder %s680_s2, %s607_s30  ;;  %p611_p0 = scmp.lt.u32.totalorder %s607_s30, %s680_s2 }
 0x180   :  { %p613_p1 = pnand %p611_p0, %p608_p13 }
 0x182   :  { %616 = shalt.err (!%p613_p1)
}
 0x183   :  { %427 = dma.vmem_to_hbm [thread:$0]  %s422_s1, 128, %s680_s2, [#allocation4], %s622_s19, %s622_s19, %s623_s20  }
 0x184   :  { %619 = dma.done.wait [#allocation4], 128  }
 0x185   :  { %620 = vsyncadd [#allocation4], 4294967168 }
 0x186   :  { %431 = vsyncpa [#allocation3], 1 }
 0x187   :  { %432 = vsyncpa [#allocation4], 1 }

</bundles_post_ra>
